<compile_context>
chip_gen: v5e
topology: v5e:2x2
jax: 0.10.0
libtpu: 0.0.40
codegen_flags: <defaults>
</compile_context>

<pallas_src>
import functools

import jax
import jax.numpy as jnp
from jax import lax
from jax.experimental import pallas as pl
from jax.experimental.pallas import tpu as pltpu

# ----------------------------- config -------------------------------------
N_PRIMITIVES = 4
PARAM_DIM = 8
IN_CHANNEL = 64
HIDDEN_SIZE = 128
LAYER_DEPTH = 4
BATCH = 32          # small demo batch -> single grid step
TILE_B = 256        # target rows per grid step for large batches (clamped below)

LANE = 128
SUBLANE = 8


def _round_up(n, m):
    return ((n + m - 1) // m) * m


# ----------------------------- kernel -------------------------------------
def _paramnet_kernel(layer_depth,
                     x_ref,
                     w_in_ref, b_in_ref,
                     w0_ref, b0_ref,
                     w1_ref, b1_ref,
                     w_out_ref, b_out_ref,
                     o_ref):
    """One batch tile of the full forward pass.

    Weight refs are indexed at each dot site (no hoisted live weight values) and the
    (1, H) bias refs are added directly (implicit sublane broadcast) to keep vreg
    pressure low at large batch tiles.
    """
    # in_conv1d: Linear(in_channel -> hidden)   (bf16 MXU operands, f32 accumulate)
    net = jnp.dot(x_ref[...].astype(jnp.bfloat16), w_in_ref[...],
                  preferred_element_type=jnp.float32) + b_in_ref[...]

    # layer_depth applications of the SAME ResnetBlockFC (shared weights)
    def block(_, net):
        h = jnp.maximum(net, 0.0)                                      # actvn (ReLU), f32
        h = jnp.dot(h.astype(jnp.bfloat16), w0_ref[...],
                    preferred_element_type=jnp.float32) + b0_ref[...]
        h = jnp.maximum(h, 0.0)                                        # actvn (ReLU), f32
        dx = jnp.dot(h.astype(jnp.bfloat16), w1_ref[...],
                     preferred_element_type=jnp.float32) + b1_ref[...]
        return net + dx                                                # identity shortcut

    net = lax.fori_loop(0, layer_depth, block, net, unroll=True)

    # LeakyReLU(0.2) then out_conv1d: Linear(hidden -> n_primitives*param_dim) (lane-padded)
    act = jnp.maximum(net, 0.2 * net)
    out = jnp.dot(act.astype(jnp.bfloat16), w_out_ref[...],
                  preferred_element_type=jnp.float32) + b_out_ref[...]
    o_ref[...] = out.astype(o_ref.dtype)


# ----------------------------- wrapper -------------------------------------
def paramnet_forward(x, kparams, *, n_primitives, param_dim, layer_depth, tile_b=TILE_B):
    """x: (B, in_channel) float32. kparams: from prepare_kernel_params.
    Returns (B, n_primitives, param_dim) float32."""
    B = x.shape[0]
    x2d = x.reshape(B, -1).astype(jnp.float32)
    in_ch = x2d.shape[1]
    out_dim = n_primitives * param_dim

    hidden = kparams["w_in"].shape[1]
    n_pad = kparams["w_out"].shape[1]

    # Batch tiling: >=128 rows per grid step in general, but never more steps than needed —
    # for small batches (B <= tile_b) the whole 8-padded batch is a single grid step.
    b_pad_min = _round_up(B, SUBLANE)
    tile_b = _round_up(max(tile_b, 128), SUBLANE)
    tile_b = min(tile_b, b_pad_min)
    b_pad = _round_up(b_pad_min, tile_b)

    # Zero-pad batch rows only; x stays at its natural in_channel width (no lane pad on K).
    x_pad = jnp.zeros((b_pad, in_ch), jnp.float32).at[:B, :].set(x2d)

    grid = (b_pad // tile_b,)

    def resident(shape):
        # Same block index every grid step -> weights/biases stay resident in VMEM.
        return pl.BlockSpec(shape, lambda i: (0, 0))

    out_pad = pl.pallas_call(
        functools.partial(_paramnet_kernel, layer_depth),
        out_shape=jax.ShapeDtypeStruct((b_pad, n_pad), jnp.float32),
        grid=grid,
        in_specs=[
            pl.BlockSpec((tile_b, in_ch), lambda i: (i, 0)),   # x tile (unpadded K)
            resident((in_ch, hidden)),                         # w_in  (bf16)
            resident((1, hidden)),                             # b_in  (f32)
            resident((hidden, hidden)),                        # w0    (bf16)
            resident((1, hidden)),                             # b0    (f32)
            resident((hidden, hidden)),                        # w1    (bf16)
            resident((1, hidden)),                             # b1    (f32)
            resident((hidden, n_pad)),                         # w_out (bf16, lane-padded)
            resident((1, n_pad)),                              # b_out (f32, lane-padded)
        ],
        out_specs=pl.BlockSpec((tile_b, n_pad), lambda i: (i, 0)),
        compiler_params=pltpu.CompilerParams(
            dimension_semantics=("parallel",)),                # shards across TCs on v7x at large B
    )(x_pad,
      kparams["w_in"], kparams["b_in"],
      kparams["w0"], kparams["b0"],
      kparams["w1"], kparams["b1"],
      kparams["w_out"], kparams["b_out"])

    return out_pad[:B, :out_dim].reshape(B, n_primitives, param_dim)


# ----------------------------- params -------------------------------------
def init_params(key, in_channel, hidden, n_primitives, param_dim):
    """Deterministic f32 parameter init. Weights stored pre-transposed (in, out)."""
    ks = jax.random.split(key, 8)
    out_dim = n_primitives * param_dim

    def lin(kw, kb, fan_in, fan_out):
        bound = 1.0 / (fan_in ** 0.5)
        w = jax.random.uniform(kw, (fan_in, fan_out), jnp.float32, -bound, bound)
        b = jax.random.uniform(kb, (1, fan_out), jnp.float32, -bound, bound)
        return w, b

    w_in, b_in = lin(ks[0], ks[1], in_channel, hidden)     # in_conv1d
    w0, b0 = lin(ks[2], ks[3], hidden, hidden)             # block.fc_0
    w1, b1 = lin(ks[4], ks[5], hidden, hidden)             # block.fc_1 (nonzero on purpose)
    w_out, b_out = lin(ks[6], ks[7], hidden, out_dim)      # out_conv1d
    return dict(w_in=w_in, b_in=b_in, w0=w0, b0=b0, w1=w1, b1=b1,
                w_out=w_out, b_out=b_out)


def prepare_kernel_params(params, *, in_channel, n_primitives, param_dim):
    """Cast weights to bf16; only the narrow output side is zero-padded to 128 lanes."""
    hidden = params["w_in"].shape[1]
    out_dim = n_primitives * param_dim
    n_pad = _round_up(out_dim, LANE)

    w_out = jnp.zeros((hidden, n_pad), jnp.bfloat16).at[:, :out_dim].set(
        params["w_out"].astype(jnp.bfloat16))
    b_out = jnp.zeros((1, n_pad), jnp.float32).at[:, :out_dim].set(
        params["b_out"].astype(jnp.float32))
    return dict(
        w_in=params["w_in"].astype(jnp.bfloat16), b_in=params["b_in"].astype(jnp.float32),
        w0=params["w0"].astype(jnp.bfloat16), b0=params["b0"].astype(jnp.float32),
        w1=params["w1"].astype(jnp.bfloat16), b1=params["b1"].astype(jnp.float32),
        w_out=w_out, b_out=b_out)


# ----------------------------- reference -----------------------------------
def paramnet_reference(x, params, *, n_primitives, param_dim, layer_depth, mxu_bf16=False):
    """Pure-JAX reference. mxu_bf16=True mirrors the kernel's bf16 MXU operands."""
    cast = (lambda a: a.astype(jnp.bfloat16).astype(jnp.float32)) if mxu_bf16 else (lambda a: a)
    dot = functools.partial(jnp.dot, precision=lax.Precision.HIGHEST)
    B = x.shape[0]
    net = dot(cast(x.reshape(B, -1)), cast(params["w_in"])) + params["b_in"]
    for _ in range(layer_depth):
        h = jnp.maximum(net, 0.0)
        h = jnp.maximum(dot(cast(h), cast(params["w0"])) + params["b0"], 0.0)
        net = net + (dot(cast(h), cast(params["w1"])) + params["b1"])
    act = jnp.where(net > 0, net, 0.2 * net)
    out = dot(cast(act), cast(params["w_out"])) + params["b_out"]
    return out.reshape(B, n_primitives, param_dim)


# ----------------------------- main ----------------------------------------
if __name__ == "__main__":
    key = jax.random.PRNGKey(0)
    kx, kp = jax.random.split(key)
    x = jax.random.normal(kx, (BATCH, IN_CHANNEL), jnp.float32)
    params = init_params(kp, IN_CHANNEL, HIDDEN_SIZE, N_PRIMITIVES, PARAM_DIM)
    kparams = prepare_kernel_params(params, in_channel=IN_CHANNEL,
                                    n_primitives=N_PRIMITIVES, param_dim=PARAM_DIM)

    out = paramnet_forward(x, kparams, n_primitives=N_PRIMITIVES,
                           param_dim=PARAM_DIM, layer_depth=LAYER_DEPTH,
                           tile_b=TILE_B)
    out = jax.block_until_ready(out)
    assert out.shape == (BATCH, N_PRIMITIVES, PARAM_DIM), out.shape

    # Tight check vs a reference that mirrors the kernel's bf16 MXU operands (f32 accumulate).
    ref_bf16 = paramnet_reference(x, params, n_primitives=N_PRIMITIVES,
                                  param_dim=PARAM_DIM, layer_depth=LAYER_DEPTH,
                                  mxu_bf16=True)
    err_bf16 = float(jnp.max(jnp.abs(out - ref_bf16)))
    assert jnp.allclose(out, ref_bf16, atol=1e-3, rtol=1e-3), err_bf16

    # Loose check vs full-f32 module semantics (difference = bf16 operand rounding only).
    ref_f32 = paramnet_reference(x, params, n_primitives=N_PRIMITIVES,
                                 param_dim=PARAM_DIM, layer_depth=LAYER_DEPTH,
                                 mxu_bf16=False)
    err_f32 = float(jnp.max(jnp.abs(out - ref_f32)))
    assert jnp.allclose(out, ref_f32, atol=5e-2, rtol=5e-2), err_f32

    print("KERNEL_OK")
</pallas_src>

<mosaic_0001>
module attributes {stable_mosaic.version = 11 : i64} {
  func.func @_paramnet_kernel(%arg0: i32, %arg1: memref<32x64xf32, #tpu.memory_space<vmem>>, %arg2: memref<64x128xbf16, #tpu.memory_space<vmem>>, %arg3: memref<1x128xf32, #tpu.memory_space<vmem>>, %arg4: memref<128x128xbf16, #tpu.memory_space<vmem>>, %arg5: memref<1x128xf32, #tpu.memory_space<vmem>>, %arg6: memref<128x128xbf16, #tpu.memory_space<vmem>>, %arg7: memref<1x128xf32, #tpu.memory_space<vmem>>, %arg8: memref<128x128xbf16, #tpu.memory_space<vmem>>, %arg9: memref<1x128xf32, #tpu.memory_space<vmem>>, %arg10: memref<32x128xf32, #tpu.memory_space<vmem>>) attributes {dimension_semantics = [#tpu.dimension_semantics<parallel>], iteration_bounds = array<i64: 1>, scalar_prefetch = 0 : i64, scratch_operands = 0 : i64, tpu.core_type = #tpu.core_type<tc>, window_params = [{transform_indices = @transform_0, window_bounds = array<i64: 32, 64>}, {pipeline_mode = #tpu.pipeline_mode<synchronous>, transform_indices = @transform_1, window_bounds = array<i64: 64, 128>}, {pipeline_mode = #tpu.pipeline_mode<synchronous>, transform_indices = @transform_2, window_bounds = array<i64: 1, 128>}, {pipeline_mode = #tpu.pipeline_mode<synchronous>, transform_indices = @transform_3, window_bounds = array<i64: 128, 128>}, {pipeline_mode = #tpu.pipeline_mode<synchronous>, transform_indices = @transform_4, window_bounds = array<i64: 1, 128>}, {pipeline_mode = #tpu.pipeline_mode<synchronous>, transform_indices = @transform_5, window_bounds = array<i64: 128, 128>}, {pipeline_mode = #tpu.pipeline_mode<synchronous>, transform_indices = @transform_6, window_bounds = array<i64: 1, 128>}, {pipeline_mode = #tpu.pipeline_mode<synchronous>, transform_indices = @transform_7, window_bounds = array<i64: 128, 128>}, {pipeline_mode = #tpu.pipeline_mode<synchronous>, transform_indices = @transform_8, window_bounds = array<i64: 1, 128>}, {transform_indices = @transform_9, window_bounds = array<i64: 32, 128>}]} {
    %c0 = arith.constant 0 : index
    %c0_0 = arith.constant 0 : index
    %0 = vector.load %arg1[%c0, %c0_0] : memref<32x64xf32, #tpu.memory_space<vmem>>, vector<32x64xf32>
    %1 = arith.truncf %0 : vector<32x64xf32> to vector<32x64xbf16>
    %c0_1 = arith.constant 0 : index
    %c0_2 = arith.constant 0 : index
    %2 = vector.load %arg2[%c0_1, %c0_2] : memref<64x128xbf16, #tpu.memory_space<vmem>>, vector<64x128xbf16>
    %cst = arith.constant dense<0.000000e+00> : vector<32x128xf32>
    %3 = tpu.matmul %1, %2, %cst {dimension_numbers = #tpu.dot_dimension_numbers<[1], [0], [0], [1], [0, 0, 1, 1], [], []>} : vector<32x64xbf16>, vector<64x128xbf16>, vector<32x128xf32> -> vector<32x128xf32>
    %c0_3 = arith.constant 0 : index
    %c0_4 = arith.constant 0 : index
    %4 = vector.load %arg3[%c0_3, %c0_4] : memref<1x128xf32, #tpu.memory_space<vmem>>, vector<1x128xf32>
    %5 = vector.broadcast %4 : vector<1x128xf32> to vector<32x128xf32>
    %6 = arith.addf %3, %5 : vector<32x128xf32>
    %c0_i32 = arith.constant 0 : i32
    %cst_5 = arith.constant 0.000000e+00 : f32
    %7 = vector.broadcast %cst_5 : f32 to vector<32x128xf32>
    %8 = arith.maximumf %6, %7 : vector<32x128xf32>
    %9 = arith.truncf %8 : vector<32x128xf32> to vector<32x128xbf16>
    %c0_6 = arith.constant 0 : index
    %c0_7 = arith.constant 0 : index
    %10 = vector.load %arg4[%c0_6, %c0_7] : memref<128x128xbf16, #tpu.memory_space<vmem>>, vector<128x128xbf16>
    %cst_8 = arith.constant dense<0.000000e+00> : vector<32x128xf32>
    %11 = tpu.matmul %9, %10, %cst_8 {dimension_numbers = #tpu.dot_dimension_numbers<[1], [0], [0], [1], [0, 0, 1, 1], [], []>} : vector<32x128xbf16>, vector<128x128xbf16>, vector<32x128xf32> -> vector<32x128xf32>
    %c0_9 = arith.constant 0 : index
    %c0_10 = arith.constant 0 : index
    %12 = vector.load %arg5[%c0_9, %c0_10] : memref<1x128xf32, #tpu.memory_space<vmem>>, vector<1x128xf32>
    %13 = vector.broadcast %12 : vector<1x128xf32> to vector<32x128xf32>
    %14 = arith.addf %11, %13 : vector<32x128xf32>
    %cst_11 = arith.constant 0.000000e+00 : f32
    %15 = vector.broadcast %cst_11 : f32 to vector<32x128xf32>
    %16 = arith.maximumf %14, %15 : vector<32x128xf32>
    %17 = arith.truncf %16 : vector<32x128xf32> to vector<32x128xbf16>
    %c0_12 = arith.constant 0 : index
    %c0_13 = arith.constant 0 : index
    %18 = vector.load %arg6[%c0_12, %c0_13] : memref<128x128xbf16, #tpu.memory_space<vmem>>, vector<128x128xbf16>
    %cst_14 = arith.constant dense<0.000000e+00> : vector<32x128xf32>
    %19 = tpu.matmul %17, %18, %cst_14 {dimension_numbers = #tpu.dot_dimension_numbers<[1], [0], [0], [1], [0, 0, 1, 1], [], []>} : vector<32x128xbf16>, vector<128x128xbf16>, vector<32x128xf32> -> vector<32x128xf32>
    %c0_15 = arith.constant 0 : index
    %c0_16 = arith.constant 0 : index
    %20 = vector.load %arg7[%c0_15, %c0_16] : memref<1x128xf32, #tpu.memory_space<vmem>>, vector<1x128xf32>
    %21 = vector.broadcast %20 : vector<1x128xf32> to vector<32x128xf32>
    %22 = arith.addf %19, %21 : vector<32x128xf32>
    %23 = arith.addf %6, %22 : vector<32x128xf32>
    %c1_i32 = arith.constant 1 : i32
    %cst_17 = arith.constant 0.000000e+00 : f32
    %24 = vector.broadcast %cst_17 : f32 to vector<32x128xf32>
    %25 = arith.maximumf %23, %24 : vector<32x128xf32>
    %26 = arith.truncf %25 : vector<32x128xf32> to vector<32x128xbf16>
    %c0_18 = arith.constant 0 : index
    %c0_19 = arith.constant 0 : index
    %27 = vector.load %arg4[%c0_18, %c0_19] : memref<128x128xbf16, #tpu.memory_space<vmem>>, vector<128x128xbf16>
    %cst_20 = arith.constant dense<0.000000e+00> : vector<32x128xf32>
    %28 = tpu.matmul %26, %27, %cst_20 {dimension_numbers = #tpu.dot_dimension_numbers<[1], [0], [0], [1], [0, 0, 1, 1], [], []>} : vector<32x128xbf16>, vector<128x128xbf16>, vector<32x128xf32> -> vector<32x128xf32>
    %c0_21 = arith.constant 0 : index
    %c0_22 = arith.constant 0 : index
    %29 = vector.load %arg5[%c0_21, %c0_22] : memref<1x128xf32, #tpu.memory_space<vmem>>, vector<1x128xf32>
    %30 = vector.broadcast %29 : vector<1x128xf32> to vector<32x128xf32>
    %31 = arith.addf %28, %30 : vector<32x128xf32>
    %cst_23 = arith.constant 0.000000e+00 : f32
    %32 = vector.broadcast %cst_23 : f32 to vector<32x128xf32>
    %33 = arith.maximumf %31, %32 : vector<32x128xf32>
    %34 = arith.truncf %33 : vector<32x128xf32> to vector<32x128xbf16>
    %c0_24 = arith.constant 0 : index
    %c0_25 = arith.constant 0 : index
    %35 = vector.load %arg6[%c0_24, %c0_25] : memref<128x128xbf16, #tpu.memory_space<vmem>>, vector<128x128xbf16>
    %cst_26 = arith.constant dense<0.000000e+00> : vector<32x128xf32>
    %36 = tpu.matmul %34, %35, %cst_26 {dimension_numbers = #tpu.dot_dimension_numbers<[1], [0], [0], [1], [0, 0, 1, 1], [], []>} : vector<32x128xbf16>, vector<128x128xbf16>, vector<32x128xf32> -> vector<32x128xf32>
    %c0_27 = arith.constant 0 : index
    %c0_28 = arith.constant 0 : index
    %37 = vector.load %arg7[%c0_27, %c0_28] : memref<1x128xf32, #tpu.memory_space<vmem>>, vector<1x128xf32>
    %38 = vector.broadcast %37 : vector<1x128xf32> to vector<32x128xf32>
    %39 = arith.addf %36, %38 : vector<32x128xf32>
    %40 = arith.addf %23, %39 : vector<32x128xf32>
    %c2_i32 = arith.constant 2 : i32
    %cst_29 = arith.constant 0.000000e+00 : f32
    %41 = vector.broadcast %cst_29 : f32 to vector<32x128xf32>
    %42 = arith.maximumf %40, %41 : vector<32x128xf32>
    %43 = arith.truncf %42 : vector<32x128xf32> to vector<32x128xbf16>
    %c0_30 = arith.constant 0 : index
    %c0_31 = arith.constant 0 : index
    %44 = vector.load %arg4[%c0_30, %c0_31] : memref<128x128xbf16, #tpu.memory_space<vmem>>, vector<128x128xbf16>
    %cst_32 = arith.constant dense<0.000000e+00> : vector<32x128xf32>
    %45 = tpu.matmul %43, %44, %cst_32 {dimension_numbers = #tpu.dot_dimension_numbers<[1], [0], [0], [1], [0, 0, 1, 1], [], []>} : vector<32x128xbf16>, vector<128x128xbf16>, vector<32x128xf32> -> vector<32x128xf32>
    %c0_33 = arith.constant 0 : index
    %c0_34 = arith.constant 0 : index
    %46 = vector.load %arg5[%c0_33, %c0_34] : memref<1x128xf32, #tpu.memory_space<vmem>>, vector<1x128xf32>
    %47 = vector.broadcast %46 : vector<1x128xf32> to vector<32x128xf32>
    %48 = arith.addf %45, %47 : vector<32x128xf32>
    %cst_35 = arith.constant 0.000000e+00 : f32
    %49 = vector.broadcast %cst_35 : f32 to vector<32x128xf32>
    %50 = arith.maximumf %48, %49 : vector<32x128xf32>
    %51 = arith.truncf %50 : vector<32x128xf32> to vector<32x128xbf16>
    %c0_36 = arith.constant 0 : index
    %c0_37 = arith.constant 0 : index
    %52 = vector.load %arg6[%c0_36, %c0_37] : memref<128x128xbf16, #tpu.memory_space<vmem>>, vector<128x128xbf16>
    %cst_38 = arith.constant dense<0.000000e+00> : vector<32x128xf32>
    %53 = tpu.matmul %51, %52, %cst_38 {dimension_numbers = #tpu.dot_dimension_numbers<[1], [0], [0], [1], [0, 0, 1, 1], [], []>} : vector<32x128xbf16>, vector<128x128xbf16>, vector<32x128xf32> -> vector<32x128xf32>
    %c0_39 = arith.constant 0 : index
    %c0_40 = arith.constant 0 : index
    %54 = vector.load %arg7[%c0_39, %c0_40] : memref<1x128xf32, #tpu.memory_space<vmem>>, vector<1x128xf32>
    %55 = vector.broadcast %54 : vector<1x128xf32> to vector<32x128xf32>
    %56 = arith.addf %53, %55 : vector<32x128xf32>
    %57 = arith.addf %40, %56 : vector<32x128xf32>
    %c3_i32 = arith.constant 3 : i32
    %cst_41 = arith.constant 0.000000e+00 : f32
    %58 = vector.broadcast %cst_41 : f32 to vector<32x128xf32>
    %59 = arith.maximumf %57, %58 : vector<32x128xf32>
    %60 = arith.truncf %59 : vector<32x128xf32> to vector<32x128xbf16>
    %c0_42 = arith.constant 0 : index
    %c0_43 = arith.constant 0 : index
    %61 = vector.load %arg4[%c0_42, %c0_43] : memref<128x128xbf16, #tpu.memory_space<vmem>>, vector<128x128xbf16>
    %cst_44 = arith.constant dense<0.000000e+00> : vector<32x128xf32>
    %62 = tpu.matmul %60, %61, %cst_44 {dimension_numbers = #tpu.dot_dimension_numbers<[1], [0], [0], [1], [0, 0, 1, 1], [], []>} : vector<32x128xbf16>, vector<128x128xbf16>, vector<32x128xf32> -> vector<32x128xf32>
    %c0_45 = arith.constant 0 : index
    %c0_46 = arith.constant 0 : index
    %63 = vector.load %arg5[%c0_45, %c0_46] : memref<1x128xf32, #tpu.memory_space<vmem>>, vector<1x128xf32>
    %64 = vector.broadcast %63 : vector<1x128xf32> to vector<32x128xf32>
    %65 = arith.addf %62, %64 : vector<32x128xf32>
    %cst_47 = arith.constant 0.000000e+00 : f32
    %66 = vector.broadcast %cst_47 : f32 to vector<32x128xf32>
    %67 = arith.maximumf %65, %66 : vector<32x128xf32>
    %68 = arith.truncf %67 : vector<32x128xf32> to vector<32x128xbf16>
    %c0_48 = arith.constant 0 : index
    %c0_49 = arith.constant 0 : index
    %69 = vector.load %arg6[%c0_48, %c0_49] : memref<128x128xbf16, #tpu.memory_space<vmem>>, vector<128x128xbf16>
    %cst_50 = arith.constant dense<0.000000e+00> : vector<32x128xf32>
    %70 = tpu.matmul %68, %69, %cst_50 {dimension_numbers = #tpu.dot_dimension_numbers<[1], [0], [0], [1], [0, 0, 1, 1], [], []>} : vector<32x128xbf16>, vector<128x128xbf16>, vector<32x128xf32> -> vector<32x128xf32>
    %c0_51 = arith.constant 0 : index
    %c0_52 = arith.constant 0 : index
    %71 = vector.load %arg7[%c0_51, %c0_52] : memref<1x128xf32, #tpu.memory_space<vmem>>, vector<1x128xf32>
    %72 = vector.broadcast %71 : vector<1x128xf32> to vector<32x128xf32>
    %73 = arith.addf %70, %72 : vector<32x128xf32>
    %74 = arith.addf %57, %73 : vector<32x128xf32>
    %cst_53 = arith.constant 2.000000e-01 : f32
    %75 = vector.broadcast %cst_53 : f32 to vector<32x128xf32>
    %76 = arith.mulf %75, %74 : vector<32x128xf32>
    %77 = arith.maximumf %74, %76 : vector<32x128xf32>
    %78 = arith.truncf %77 : vector<32x128xf32> to vector<32x128xbf16>
    %c0_54 = arith.constant 0 : index
    %c0_55 = arith.constant 0 : index
    %79 = vector.load %arg8[%c0_54, %c0_55] : memref<128x128xbf16, #tpu.memory_space<vmem>>, vector<128x128xbf16>
    %cst_56 = arith.constant dense<0.000000e+00> : vector<32x128xf32>
    %80 = tpu.matmul %78, %79, %cst_56 {dimension_numbers = #tpu.dot_dimension_numbers<[1], [0], [0], [1], [0, 0, 1, 1], [], []>} : vector<32x128xbf16>, vector<128x128xbf16>, vector<32x128xf32> -> vector<32x128xf32>
    %c0_57 = arith.constant 0 : index
    %c0_58 = arith.constant 0 : index
    %81 = vector.load %arg9[%c0_57, %c0_58] : memref<1x128xf32, #tpu.memory_space<vmem>>, vector<1x128xf32>
    %82 = vector.broadcast %81 : vector<1x128xf32> to vector<32x128xf32>
    %83 = arith.addf %80, %82 : vector<32x128xf32>
    %c0_59 = arith.constant 0 : index
    %c0_60 = arith.constant 0 : index
    %84 = vector.load %arg10[%c0_59, %c0_60] : memref<32x128xf32, #tpu.memory_space<vmem>>, vector<32x128xf32>
    tpu.vector_store %arg10[%c0_59, %c0_60], %83 {strides = array<i32>} : memref<32x128xf32, #tpu.memory_space<vmem>>, vector<32x128xf32>,
    return
  }
  func.func @transform_0(%arg0: i32) -> (i32, i32) {
    %c0_i32 = arith.constant 0 : i32
    %c0_i32_0 = arith.constant 0 : i32
    return %arg0, %c0_i32 : i32, i32
  }
  func.func @transform_1(%arg0: i32) -> (i32, i32) {
    %c0_i32 = arith.constant 0 : i32
    %c0_i32_0 = arith.constant 0 : i32
    %c0_i32_1 = arith.constant 0 : i32
    return %c0_i32, %c0_i32_0 : i32, i32
  }
  func.func @transform_2(%arg0: i32) -> (i32, i32) {
    %c0_i32 = arith.constant 0 : i32
    %c0_i32_0 = arith.constant 0 : i32
    %c0_i32_1 = arith.constant 0 : i32
    return %c0_i32, %c0_i32_0 : i32, i32
  }
  func.func @transform_3(%arg0: i32) -> (i32, i32) {
    %c0_i32 = arith.constant 0 : i32
    %c0_i32_0 = arith.constant 0 : i32
    %c0_i32_1 = arith.constant 0 : i32
    return %c0_i32, %c0_i32_0 : i32, i32
  }
  func.func @transform_4(%arg0: i32) -> (i32, i32) {
    %c0_i32 = arith.constant 0 : i32
    %c0_i32_0 = arith.constant 0 : i32
    %c0_i32_1 = arith.constant 0 : i32
    return %c0_i32, %c0_i32_0 : i32, i32
  }
  func.func @transform_5(%arg0: i32) -> (i32, i32) {
    %c0_i32 = arith.constant 0 : i32
    %c0_i32_0 = arith.constant 0 : i32
    %c0_i32_1 = arith.constant 0 : i32
    return %c0_i32, %c0_i32_0 : i32, i32
  }
  func.func @transform_6(%arg0: i32) -> (i32, i32) {
    %c0_i32 = arith.constant 0 : i32
    %c0_i32_0 = arith.constant 0 : i32
    %c0_i32_1 = arith.constant 0 : i32
    return %c0_i32, %c0_i32_0 : i32, i32
  }
  func.func @transform_7(%arg0: i32) -> (i32, i32) {
    %c0_i32 = arith.constant 0 : i32
    %c0_i32_0 = arith.constant 0 : i32
    %c0_i32_1 = arith.constant 0 : i32
    return %c0_i32, %c0_i32_0 : i32, i32
  }
  func.func @transform_8(%arg0: i32) -> (i32, i32) {
    %c0_i32 = arith.constant 0 : i32
    %c0_i32_0 = arith.constant 0 : i32
    %c0_i32_1 = arith.constant 0 : i32
    return %c0_i32, %c0_i32_0 : i32, i32
  }
  func.func @transform_9(%arg0: i32) -> (i32, i32) {
    %c0_i32 = arith.constant 0 : i32
    %c0_i32_0 = arith.constant 0 : i32
    return %arg0, %c0_i32 : i32, i32
  }
}

</mosaic_0001>

<bundles_post_ra>
// kernel: tpu_custom_call.1
= control target key start
LH: loop header
LB: loop body
LE: loop exit
PB: predicated region body
PF: predicated region fallthrough
CT: control target
= control target key end

     0   :  { %14 = vsyncpa [#allocation3], 0  ;;  %s1134_s0 = inlined_call_operand.hbm [shape: f32[32,64], index: 0, kind: input, shape index: {}]   ;;  %s1135_s1 = inlined_call_operand.hbm [shape: bf16[64,128], index: 1, kind: input, shape index: {}]   ;;  %s1136_s2 = inlined_call_operand.vmem [shape: f32[1,128], index: 2, kind: input, shape index: {}]   ;;  %s1137_s3 = inlined_call_operand.hbm [shape: bf16[128,128], index: 3, kind: input, shape index: {}]   ;;  %s1138_s4 = inlined_call_operand.vmem [shape: f32[1,128], index: 4, kind: input, shape index: {}]   ;;  %s1139_s5 = inlined_call_operand.hbm [shape: bf16[128,128], index: 5, kind: input, shape index: {}]   ;;  %s1140_s6 = inlined_call_operand.vmem [shape: f32[1,128], index: 6, kind: input, shape index: {}]   ;;  %s1141_s7 = inlined_call_operand.hbm [shape: bf16[128,128], index: 7, kind: input, shape index: {}]   ;;  %s1142_s8 = inlined_call_operand.vmem [shape: f32[1,128], index: 8, kind: input, shape index: {}]   ;;  %s1143_s9 = inlined_call_operand.hbm [shape: f32[32,128], index: 9, kind: output, shape index: {}]  }
   0x1   :  { %15 = vsyncpa [#allocation6], 0 }
   0x2   :  { %16 = vsyncpa [#allocation9], 0  ;;  %s35_s11 = sshll.u32 %s1135_s1, 4  ;;  %s36_s11 = int_to_ptr.hbm [resolvable:$true] %s35_s11 }
   0x3   :  { %17 = vsyncpa [#allocation4], 0  ;;  %s970_s12 = smov [#allocation5]   ;;  %s65_s16 = sshll.u32 %s1139_s5, 4  ;;  %s66_s16 = int_to_ptr.hbm [resolvable:$true] %s65_s16 }
   0x4   :  { %s37_s13 = sshll.u32 %s970_s12, 4  ;;  %s971_s17 = smov 64   ;;  %s38_s13 = int_to_ptr.vmem [resolvable:$true] %s37_s13 }
   0x5   :  { %s972_s18 = smov 4   ;;  %s973_s19 = smov [#allocation8]  }
   0x6   :  { %43 = dma.hbm_to_vmem [thread:$0]  %s36_s11, 512, %s38_s13, [#allocation6], %s971_s17, %s971_s17, %s972_s18  }
   0x7   :  { %s67_s20 = sshll.u32 %s973_s19, 4  ;;  %s22_s22 = sshll.u32 %s1134_s0, 4  ;;  %s68_s20 = int_to_ptr.vmem [resolvable:$true] %s67_s20  ;;  %s23_s22 = int_to_ptr.hbm [resolvable:$true] %s22_s22 }
   0x8   :  { %73 = dma.hbm_to_vmem [thread:$0]  %s66_s16, 1024, %s68_s20, [#allocation9], %s971_s17, %s971_s17, %s972_s18  }
   0x9   :  { %s974_s5 = smov [#allocation2]   ;;  %s50_s26 = sshll.u32 %s1137_s3, 4  ;;  %s51_s26 = int_to_ptr.hbm [resolvable:$true] %s50_s26 }
   0xa   :  { %s24_s23 = sshll.u32 %s974_s5, 4  ;;  %s975_s27 = smov 128   ;;  %s25_s23 = int_to_ptr.vmem [resolvable:$true] %s24_s23 }
   0xb   :  { %s976_s28 = smov 8   ;;  %s977_s0 = smov [#allocation7]  }
   0xc   :  { %30 = dma.hbm_to_vmem [thread:$0]  %s23_s22, 512, %s25_s23, [#allocation3], %s975_s27, %s975_s27, %s976_s28  }
   0xd   :  { %s52_s29 = sshll.u32 %s977_s0, 4  ;;  %s80_s11 = sshll.u32 %s1141_s7, 4  ;;  %s53_s29 = int_to_ptr.vmem [resolvable:$true] %s52_s29  ;;  %s81_s11 = int_to_ptr.hbm [resolvable:$true] %s80_s11 }
   0xe   :  { %58 = dma.hbm_to_vmem [thread:$0]  %s51_s26, 1024, %s53_s29, [#allocation6], %s971_s17, %s971_s17, %s972_s18  }
   0xf   :  { %s978_s3 = smov [#allocation10]  }
  0x10   :  { %s82_s12 = sshll.u32 %s978_s3, 4  ;;  %s83_s12 = int_to_ptr.vmem [resolvable:$true] %s82_s12 }
  0x11   :  { %88 = dma.hbm_to_vmem [thread:$0]  %s81_s11, 1024, %s83_s12, [#allocation9], %s971_s17, %s971_s17, %s972_s18  }
  0x12   :  { %962 = dma.done.wait [#allocation3], 512  }
  0x13   :  { %963 = vsyncadd [#allocation3], 4294966784 }
  0x14   :  { %964 = dma.done.wait [#allocation6], 1536  }
  0x15   :  { %965 = vsyncadd [#allocation6], 4294965760 }
  0x16   :  { %966 = dma.done.wait [#allocation9], 2048  }
  0x17   :  { %967 = vsyncadd [#allocation9], 4294965248  ;;  %v771_v0 = vld [vmem:[#allocation5 + $0x18] sm:$0xff]  ;;  %v770_v1 = vld [vmem:[#allocation5 + $0x10] sm:$0xff]  ;;  %vm154_vm0 = vcmask 523264   ;;  %s979_s17 = smov [#allocation11]  }
  0x18   :  { %165 = vmatpush.bf16.msra.mxu0 %v771_v0  ;;  %v779_v2 = vld [vmem:[#allocation7 + $0x38] sm:$0xff]  ;;  %v778_v3 = vld [vmem:[#allocation7 + $0x30] sm:$0xff]  ;;  %v769_v4 = vld [vmem:[#allocation5 + $0x8] sm:$0xff]  ;;  %s637_s18 = sshll.u32 %s979_s17, 4  ;;  %s639_s21 = sshll.u32 %s1143_s9, 4  ;;  %s638_s18 = int_to_ptr.vmem [resolvable:$true] %s637_s18  ;;  %s640_s21 = int_to_ptr.hbm [resolvable:$true] %s639_s21 }
  0x19   :  { %254 = vmatpush.bf16.msra.mxu1 %v779_v2  ;;  %376 = vmatpush.bf16.msra.mxu3 %v779_v2  ;;  %v777_v5 = vld [vmem:[#allocation7 + $0x28] sm:$0xff]  ;;  %v768_v6 = vld [vmem:[#allocation5] sm:$0xff]  ;;  %v114_v11 = vld [vmem:[#allocation2 + $0x10] sm:$0xff] }
  0x1a   :  { %v112_v7 = vld [vmem:[#allocation2] sm:$0xff]  ;;  %v113_v8 = vld [vmem:[#allocation2 + $0x8] sm:$0xff]  ;;  %v115_v12 = vld [vmem:[#allocation2 + $0x18] sm:$0xff] }
  0x1b   :  { %v776_v9 = vld [vmem:[#allocation7 + $0x20] sm:$0xff]  ;;  %v116_v10 = vpack.c.bf16 %v113_v8, %v112_v7  ;;  %v117_v13 = vpack.c.bf16 %v115_v12, %v114_v11  ;;  %v775_v14 = vld [vmem:[#allocation7 + $0x18] sm:$0xff]  ;;  %v774_v15 = vld [vmem:[#allocation7 + $0x10] sm:$0xff] }
  0x1c   :  { %166 = vmatpush.bf16.msra.mxu0 %v770_v1  ;;  %v773_v16 = vld [vmem:[#allocation7 + $0x8] sm:$0xff]  ;;  %v772_v17 = vld [vmem:[#allocation7] sm:$0xff]  ;;  %v787_v18 = vld [vmem:[#allocation8 + $0x38] sm:$0xff] }
  0x1d   :  { %255 = vmatpush.bf16.msra.mxu1 %v778_v3  ;;  %377 = vmatpush.bf16.msra.mxu3 %v778_v3  ;;  %v786_v20 = vld [vmem:[#allocation8 + $0x30] sm:$0xff]  ;;  %v814_v21 = vld [vmem:[%s1136_s2] ss:$0 sm:$0xff]  ;;  %v785_v22 = vld [vmem:[#allocation8 + $0x28] sm:$0xff] }
  0x1e   :  { %347 = vmatpush.bf16.msra.mxu2 %v787_v18  ;;  %v784_v26 = vld [vmem:[#allocation8 + $0x20] sm:$0xff]  ;;  %v783_v37 = vld [vmem:[#allocation8 + $0x18] sm:$0xff]  ;;  %v782_v38 = vld [vmem:[#allocation8 + $0x10] sm:$0xff] }
  0x1f   :  { %v781_v39 = vld [vmem:[#allocation8 + $0x8] sm:$0xff]  ;;  %v780_v40 = vld [vmem:[#allocation8] sm:$0xff] }
  0x20   :  { %167 = vmatpush.bf16.msra.mxu0 %v769_v4  ;;  %v1078_v42 = vld [vmem:[%s1138_s4] ss:$0 sm:$0xff] }
  0x21   :  { %256 = vmatpush.bf16.msra.mxu1 %v777_v5  ;;  %378 = vmatpush.bf16.msra.mxu3 %v777_v5  ;;  %v1087_v57 = vld [vmem:[%s1140_s6] ss:$0 sm:$0xff] }
  0x22   :  { %348 = vmatpush.bf16.msra.mxu2 %v786_v20 }
  0x24   :  { %168 = vmatpush.bf16.msra.mxu0 %v768_v6 }
  0x25   :  { %257 = vmatpush.bf16.msra.mxu1 %v776_v9  ;;  %379 = vmatpush.bf16.msra.mxu3 %v776_v9 }
  0x26   :  { %349 = vmatpush.bf16.msra.mxu2 %v785_v22 }
  0x27   :  { %670 = vmatmul.msk.bf16.vlgmr.msra.gmra.mxu0 %vm154_vm0, %v116_v10 }
  0x28   :  { %401 = vmatpush.bf16.msrb.mxu0 %v787_v18 }
  0x29   :  { %258 = vmatpush.bf16.msra.mxu1 %v775_v14  ;;  %380 = vmatpush.bf16.msra.mxu3 %v775_v14 }
  0x2a   :  { %350 = vmatpush.bf16.msra.mxu2 %v784_v26 }
  0x2c   :  { %402 = vmatpush.bf16.msrb.mxu0 %v786_v20 }
  0x2d   :  { %259 = vmatpush.bf16.msra.mxu1 %v774_v15  ;;  %381 = vmatpush.bf16.msra.mxu3 %v774_v15 }
  0x2e   :  { %351 = vmatpush.bf16.msra.mxu2 %v783_v37 }
  0x30   :  { %403 = vmatpush.bf16.msrb.mxu0 %v785_v22 }
  0x31   :  { %260 = vmatpush.bf16.msra.mxu1 %v773_v16  ;;  %382 = vmatpush.bf16.msra.mxu3 %v773_v16 }
  0x32   :  { %352 = vmatpush.bf16.msra.mxu2 %v782_v38 }
  0x34   :  { %404 = vmatpush.bf16.msrb.mxu0 %v784_v26 }
  0x35   :  { %261 = vmatpush.bf16.msra.mxu1 %v772_v17  ;;  %383 = vmatpush.bf16.msra.mxu3 %v772_v17 }
  0x36   :  { %353 = vmatpush.bf16.msra.mxu2 %v781_v39 }
  0x37   :  { %671 = vmatmul.msk.bf16.gmra.mxu0 %vm154_vm0, %v117_v13 }
  0x38   :  { %405 = vmatpush.bf16.msrb.mxu0 %v783_v37 }
  0x39   :  { %430 = vmatpush.bf16.msrb.mxu1 %v779_v2  ;;  %484 = vmatpush.bf16.msrb.mxu3 %v779_v2 }
  0x3a   :  { %354 = vmatpush.bf16.msra.mxu2 %v780_v40 }
  0x3c   :  { %406 = vmatpush.bf16.msrb.mxu0 %v782_v38 }
  0x3d   :  { %431 = vmatpush.bf16.msrb.mxu1 %v778_v3  ;;  %485 = vmatpush.bf16.msrb.mxu3 %v778_v3 }
  0x3e   :  { %455 = vmatpush.bf16.msrb.mxu2 %v787_v18 }
  0x40   :  { %407 = vmatpush.bf16.msrb.mxu0 %v781_v39 }
  0x41   :  { %432 = vmatpush.bf16.msrb.mxu1 %v777_v5  ;;  %486 = vmatpush.bf16.msrb.mxu3 %v777_v5 }
  0x42   :  { %456 = vmatpush.bf16.msrb.mxu2 %v786_v20 }
  0x44   :  { %408 = vmatpush.bf16.msrb.mxu0 %v780_v40 }
  0x45   :  { %433 = vmatpush.bf16.msrb.mxu1 %v776_v9  ;;  %487 = vmatpush.bf16.msrb.mxu3 %v776_v9 }
  0x46   :  { %457 = vmatpush.bf16.msrb.mxu2 %v785_v22 }
  0x48   :  { %509 = vmatpush.bf16.msra.mxu0 %v787_v18 }
  0x49   :  { %434 = vmatpush.bf16.msrb.mxu1 %v775_v14  ;;  %488 = vmatpush.bf16.msrb.mxu3 %v775_v14 }
  0x4a   :  { %458 = vmatpush.bf16.msrb.mxu2 %v784_v26 }
  0x4c   :  { %510 = vmatpush.bf16.msra.mxu0 %v786_v20 }
  0x4d   :  { %435 = vmatpush.bf16.msrb.mxu1 %v774_v15  ;;  %489 = vmatpush.bf16.msrb.mxu3 %v774_v15 }
  0x4e   :  { %459 = vmatpush.bf16.msrb.mxu2 %v783_v37 }
  0x50   :  { %511 = vmatpush.bf16.msra.mxu0 %v785_v22 }
  0x51   :  { %436 = vmatpush.bf16.msrb.mxu1 %v773_v16  ;;  %490 = vmatpush.bf16.msrb.mxu3 %v773_v16 }
  0x52   :  { %460 = vmatpush.bf16.msrb.mxu2 %v782_v38 }
  0x54   :  { %512 = vmatpush.bf16.msra.mxu0 %v784_v26 }
  0x55   :  { %437 = vmatpush.bf16.msrb.mxu1 %v772_v17  ;;  %491 = vmatpush.bf16.msrb.mxu3 %v772_v17 }
  0x56   :  { %461 = vmatpush.bf16.msrb.mxu2 %v781_v39 }
  0x58   :  { %513 = vmatpush.bf16.msra.mxu0 %v783_v37 }
  0x5a   :  { %462 = vmatpush.bf16.msrb.mxu2 %v780_v40 }
  0x5c   :  { %514 = vmatpush.bf16.msra.mxu0 %v782_v38 }
  0x60   :  { %515 = vmatpush.bf16.msra.mxu0 %v781_v39 }
  0x64   :  { %516 = vmatpush.bf16.msra.mxu0 %v780_v40 }
  0xa4   :  { %v170_v19 = vpop.f32.mrf.mxu0 }
  0xa5   :  { %v1063_v23 = vadd.f32 %v814_v21, %v170_v19 }
  0xa7   :  { %v180_v27 = vmax.f32 %v1063_v23, 0.0 }
  0xac   :  { %v172_v24 = vpop.f32.mrf.mxu0 }
  0xad   :  { %v1065_v25 = vadd.f32 %v814_v21, %v172_v24 }
  0xaf   :  { %v181_v28 = vmax.f32 %v1065_v25, 0.0 }
  0xb1   :  { %v184_v29 = vpack.c.bf16 %v181_v28, %v180_v27 }
  0xb3   :  { %262 = vmatmul.bf16.vlgmr.msra.gmra.mxu1 %v184_v29 }
  0xb4   :  { %v175_v30 = vpop.f32.mrf.mxu0 }
  0xb5   :  { %v1069_v31 = vadd.f32 %v814_v21, %v175_v30 }
  0xb7   :  { %v182_v34 = vmax.f32 %v1069_v31, 0.0 }
  0xbc   :  { %v177_v32 = vpop.f32.mrf.mxu0 }
  0xbd   :  { %v1071_v33 = vadd.f32 %v814_v21, %v177_v32 }
  0xbf   :  { %v183_v35 = vmax.f32 %v1071_v33, 0.0 }
  0xc1   :  { %v185_v36 = vpack.c.bf16 %v183_v35, %v182_v34 }
  0xc3   :  { %267 = vmatmul.bf16.gmra.mxu1 %v185_v36 }
 0x130   :  { %v263_v41 = vpop.f32.mrf.mxu1 }
 0x131   :  { %v264_v43 = vadd.f32 %v1078_v42, %v263_v41 }
 0x133   :  { %v273_v46 = vmax.f32 %v264_v43, 0.0 }
 0x138   :  { %v265_v44 = vpop.f32.mrf.mxu1 }
 0x139   :  { %v266_v45 = vadd.f32 %v1078_v42, %v265_v44 }
 0x13b   :  { %v274_v47 = vmax.f32 %v266_v45, 0.0 }
 0x13d   :  { %v277_v48 = vpack.c.bf16 %v274_v47, %v273_v46 }
 0x13f   :  { %355 = vmatmul.bf16.vlgmr.msra.gmra.mxu2 %v277_v48 }
 0x140   :  { %v268_v49 = vpop.f32.mrf.mxu1 }
 0x141   :  { %v269_v50 = vadd.f32 %v1078_v42, %v268_v49 }
 0x143   :  { %v275_v53 = vmax.f32 %v269_v50, 0.0 }
 0x148   :  { %v270_v51 = vpop.f32.mrf.mxu1 }
 0x149   :  { %v271_v52 = vadd.f32 %v1078_v42, %v270_v51 }
 0x14b   :  { %v276_v54 = vmax.f32 %v271_v52, 0.0 }
 0x14d   :  { %v278_v55 = vpack.c.bf16 %v276_v54, %v275_v53 }
 0x14f   :  { %360 = vmatmul.bf16.gmra.mxu2 %v278_v55 }
 0x1c2   :  { %v356_v56 = vpop.f32.mrf.mxu2 }
 0x1c3   :  { %v357_v58 = vadd.f32 %v1087_v57, %v356_v56 }
 0x1c5   :  { %v366_v60 = vadd.f32 %v357_v58, %v1063_v23 }
 0x1c7   :  { %v370_v63 = vmax.f32 %v366_v60, 0.0 }
 0x1ca   :  { %v358_v59 = vpop.f32.mrf.mxu2 }
 0x1cb   :  { %v359_v61 = vadd.f32 %v1087_v57, %v358_v59 }
 0x1cd   :  { %v367_v62 = vadd.f32 %v359_v61, %v1065_v25 }
 0x1cf   :  { %v371_v0 = vmax.f32 %v367_v62, 0.0 }
 0x1d1   :  { %v374_v1 = vpack.c.bf16 %v371_v0, %v370_v63 }
 0x1d2   :  { %v361_v2 = vpop.f32.mrf.mxu2 }
 0x1d3   :  { %384 = vmatmul.bf16.vlgmr.msra.gmra.mxu3 %v374_v1  ;;  %v362_v3 = vadd.f32 %v1087_v57, %v361_v2 }
 0x1d5   :  { %v368_v5 = vadd.f32 %v362_v3, %v1069_v31 }
 0x1d7   :  { %v372_v8 = vmax.f32 %v368_v5, 0.0 }
 0x1da   :  { %v363_v4 = vpop.f32.mrf.mxu2 }
 0x1db   :  { %v364_v6 = vadd.f32 %v1087_v57, %v363_v4 }
 0x1dd   :  { %v369_v7 = vadd.f32 %v364_v6, %v1071_v33 }
 0x1df   :  { %v373_v9 = vmax.f32 %v369_v7, 0.0 }
 0x1e1   :  { %v375_v10 = vpack.c.bf16 %v373_v9, %v372_v8 }
 0x1e3   :  { %389 = vmatmul.bf16.gmra.mxu3 %v375_v10 }
 0x256   :  { %v385_v11 = vpop.f32.mrf.mxu3 }
 0x257   :  { %v386_v12 = vadd.f32 %v1078_v42, %v385_v11 }
 0x259   :  { %v395_v15 = vmax.f32 %v386_v12, 0.0 }
 0x25e   :  { %v387_v13 = vpop.f32.mrf.mxu3 }
 0x25f   :  { %v388_v14 = vadd.f32 %v1078_v42, %v387_v13  ;;  %v795_v13 = vld [vmem:[#allocation10 + $0x38] sm:$0xff] }
 0x260   :  { %610 = vmatpush.bf16.msra.mxu1 %v795_v13  ;;  %796 = vmatpush.bf16.msra.mxu2 %v795_v13 }
 0x261   :  { %v396_v16 = vmax.f32 %v388_v14, 0.0 }
 0x263   :  { %v399_v17 = vpack.c.bf16 %v396_v16, %v395_v15  ;;  %v794_v15 = vld [vmem:[#allocation10 + $0x30] sm:$0xff]  ;;  %v793_v16 = vld [vmem:[#allocation10 + $0x28] sm:$0xff] }
 0x264   :  { %611 = vmatpush.bf16.msra.mxu1 %v794_v15  ;;  %797 = vmatpush.bf16.msra.mxu2 %v794_v15 }
 0x265   :  { %409 = vmatmul.bf16.vlgmr.msrb.gmra.mxu0 %v399_v17 }
 0x266   :  { %v390_v18 = vpop.f32.mrf.mxu3 }
 0x267   :  { %v391_v19 = vadd.f32 %v1078_v42, %v390_v18 }
 0x268   :  { %612 = vmatpush.bf16.msra.mxu1 %v793_v16  ;;  %798 = vmatpush.bf16.msra.mxu2 %v793_v16 }
 0x269   :  { %v397_v22 = vmax.f32 %v391_v19, 0.0 }
 0x26e   :  { %v392_v20 = vpop.f32.mrf.mxu3 }
 0x26f   :  { %v393_v21 = vadd.f32 %v1078_v42, %v392_v20 }
 0x271   :  { %v398_v23 = vmax.f32 %v393_v21, 0.0 }
 0x273   :  { %v400_v24 = vpack.c.bf16 %v398_v23, %v397_v22 }
 0x275   :  { %414 = vmatmul.bf16.gmra.mxu0 %v400_v24 }
 0x2e2   :  { %v410_v25 = vpop.f32.mrf.mxu0 }
 0x2e3   :  { %v411_v26 = vadd.f32 %v1087_v57, %v410_v25 }
 0x2e5   :  { %v420_v28 = vadd.f32 %v411_v26, %v366_v60 }
 0x2e7   :  { %v424_v31 = vmax.f32 %v420_v28, 0.0 }
 0x2ea   :  { %v412_v27 = vpop.f32.mrf.mxu0 }
 0x2eb   :  { %v413_v29 = vadd.f32 %v1087_v57, %v412_v27 }
 0x2ed   :  { %v421_v30 = vadd.f32 %v413_v29, %v367_v62 }
 0x2ef   :  { %v425_v32 = vmax.f32 %v421_v30, 0.0 }
 0x2f1   :  { %v428_v33 = vpack.c.bf16 %v425_v32, %v424_v31  ;;  %v791_v31 = vld [vmem:[#allocation10 + $0x18] sm:$0xff]  ;;  %v790_v32 = vld [vmem:[#allocation10 + $0x10] sm:$0xff] }
 0x2f2   :  { %v415_v34 = vpop.f32.mrf.mxu0 }
 0x2f3   :  { %438 = vmatmul.bf16.vlgmr.msrb.gmra.mxu1 %v428_v33  ;;  %v416_v35 = vadd.f32 %v1087_v57, %v415_v34  ;;  %v789_v33 = vld [vmem:[#allocation10 + $0x8] sm:$0xff]  ;;  %v788_v34 = vld [vmem:[#allocation10] sm:$0xff] }
 0x2f5   :  { %v422_v37 = vadd.f32 %v416_v35, %v368_v5 }
 0x2f7   :  { %v426_v40 = vmax.f32 %v422_v37, 0.0 }
 0x2fa   :  { %v417_v36 = vpop.f32.mrf.mxu0 }
 0x2fb   :  { %v418_v38 = vadd.f32 %v1087_v57, %v417_v36 }
 0x2fd   :  { %v423_v39 = vadd.f32 %v418_v38, %v369_v7 }
 0x2ff   :  { %v427_v41 = vmax.f32 %v423_v39, 0.0 }
 0x301   :  { %v429_v43 = vpack.c.bf16 %v427_v41, %v426_v40 }
 0x303   :  { %443 = vmatmul.bf16.gmra.mxu1 %v429_v43 }
 0x370   :  { %v439_v44 = vpop.f32.mrf.mxu1 }
 0x371   :  { %v440_v45 = vadd.f32 %v1078_v42, %v439_v44 }
 0x373   :  { %v449_v48 = vmax.f32 %v440_v45, 0.0 }
 0x378   :  { %v441_v46 = vpop.f32.mrf.mxu1 }
 0x379   :  { %v442_v47 = vadd.f32 %v1078_v42, %v441_v46 }
 0x37b   :  { %v450_v49 = vmax.f32 %v442_v47, 0.0 }
 0x37d   :  { %v453_v50 = vpack.c.bf16 %v450_v49, %v449_v48 }
 0x37f   :  { %463 = vmatmul.bf16.vlgmr.msrb.gmra.mxu2 %v453_v50 }
 0x380   :  { %v444_v51 = vpop.f32.mrf.mxu1 }
 0x381   :  { %v445_v52 = vadd.f32 %v1078_v42, %v444_v51 }
 0x383   :  { %v451_v55 = vmax.f32 %v445_v52, 0.0 }
 0x388   :  { %v446_v53 = vpop.f32.mrf.mxu1 }
 0x389   :  { %v447_v54 = vadd.f32 %v1078_v42, %v446_v53 }
 0x38b   :  { %v452_v56 = vmax.f32 %v447_v54, 0.0 }
 0x38d   :  { %v454_v58 = vpack.c.bf16 %v452_v56, %v451_v55 }
 0x38f   :  { %468 = vmatmul.bf16.gmra.mxu2 %v454_v58  ;;  %v817_v58 = vld [vmem:[%s1142_s8] ss:$0 sm:$0xff] }
 0x402   :  { %v464_v59 = vpop.f32.mrf.mxu2 }
 0x403   :  { %v465_v60 = vadd.f32 %v1087_v57, %v464_v59 }
 0x405   :  { %v474_v62 = vadd.f32 %v465_v60, %v420_v28 }
 0x407   :  { %v478_v1 = vmax.f32 %v474_v62, 0.0 }
 0x40a   :  { %v466_v61 = vpop.f32.mrf.mxu2 }
 0x40b   :  { %v467_v63 = vadd.f32 %v1087_v57, %v466_v61 }
 0x40d   :  { %v475_v0 = vadd.f32 %v467_v63, %v421_v30  ;;  %v792_v30 = vld [vmem:[#allocation10 + $0x20] sm:$0xff] }
 0x40e   :  { %613 = vmatpush.bf16.msra.mxu1 %v792_v30  ;;  %799 = vmatpush.bf16.msra.mxu2 %v792_v30 }
 0x40f   :  { %v479_v2 = vmax.f32 %v475_v0, 0.0 }
 0x411   :  { %v482_v3 = vpack.c.bf16 %v479_v2, %v478_v1 }
 0x412   :  { %v469_v4 = vpop.f32.mrf.mxu2  ;;  %614 = vmatpush.bf16.msra.mxu1 %v791_v31  ;;  %800 = vmatpush.bf16.msra.mxu2 %v791_v31 }
 0x413   :  { %492 = vmatmul.bf16.vlgmr.msrb.gmra.mxu3 %v482_v3  ;;  %v470_v5 = vadd.f32 %v1087_v57, %v469_v4 }
 0x415   :  { %v476_v7 = vadd.f32 %v470_v5, %v422_v37 }
 0x416   :  { %615 = vmatpush.bf16.msra.mxu1 %v790_v32  ;;  %801 = vmatpush.bf16.msra.mxu2 %v790_v32 }
 0x417   :  { %v480_v10 = vmax.f32 %v476_v7, 0.0 }
 0x41a   :  { %v471_v6 = vpop.f32.mrf.mxu2  ;;  %616 = vmatpush.bf16.msra.mxu1 %v789_v33  ;;  %802 = vmatpush.bf16.msra.mxu2 %v789_v33 }
 0x41b   :  { %v472_v8 = vadd.f32 %v1087_v57, %v471_v6 }
 0x41d   :  { %v1113_v9 = vadd.f32 %v472_v8, %v423_v39 }
 0x41e   :  { %617 = vmatpush.bf16.msra.mxu1 %v788_v34  ;;  %803 = vmatpush.bf16.msra.mxu2 %v788_v34 }
 0x41f   :  { %v481_v11 = vmax.f32 %v1113_v9, 0.0 }
 0x421   :  { %v483_v12 = vpack.c.bf16 %v481_v11, %v480_v10 }
 0x423   :  { %497 = vmatmul.bf16.gmra.mxu3 %v483_v12 }
 0x496   :  { %v493_v14 = vpop.f32.mrf.mxu3 }
 0x497   :  { %v494_v17 = vadd.f32 %v1078_v42, %v493_v14 }
 0x499   :  { %v503_v20 = vmax.f32 %v494_v17, 0.0 }
 0x49e   :  { %v495_v18 = vpop.f32.mrf.mxu3 }
 0x49f   :  { %v496_v19 = vadd.f32 %v1078_v42, %v495_v18 }
 0x4a1   :  { %v504_v21 = vmax.f32 %v496_v19, 0.0 }
 0x4a3   :  { %v507_v22 = vpack.c.bf16 %v504_v21, %v503_v20 }
 0x4a5   :  { %517 = vmatmul.bf16.vlgmr.msra.gmra.mxu0 %v507_v22 }
 0x4a6   :  { %v498_v23 = vpop.f32.mrf.mxu3 }
 0x4a7   :  { %v499_v24 = vadd.f32 %v1078_v42, %v498_v23 }
 0x4a9   :  { %v505_v27 = vmax.f32 %v499_v24, 0.0 }
 0x4ae   :  { %v500_v25 = vpop.f32.mrf.mxu3 }
 0x4af   :  { %v501_v26 = vadd.f32 %v1078_v42, %v500_v25 }
 0x4b1   :  { %v506_v28 = vmax.f32 %v501_v26, 0.0 }
 0x4b3   :  { %v508_v29 = vpack.c.bf16 %v506_v28, %v505_v27 }
 0x4b5   :  { %522 = vmatmul.bf16.gmra.mxu0 %v508_v29 }
 0x522   :  { %v518_v42 = vpop.f32.mrf.mxu0 }
 0x523   :  { %v519_v35 = vadd.f32 %v1087_v57, %v518_v42 }
 0x525   :  { %v528_v36 = vadd.f32 %v519_v35, %v474_v62 }
 0x527   :  { %v532_v39 = vmul.f32 0.2, %v528_v36 }
 0x529   :  { %v536_v43 = vmax.f32 %v528_v36, %v532_v39 }
 0x52a   :  { %v520_v37 = vpop.f32.mrf.mxu0 }
 0x52b   :  { %v521_v38 = vadd.f32 %v1087_v57, %v520_v37 }
 0x52d   :  { %v529_v40 = vadd.f32 %v521_v38, %v475_v0 }
 0x52f   :  { %v533_v41 = vmul.f32 0.2, %v529_v40 }
 0x531   :  { %v537_v44 = vmax.f32 %v529_v40, %v533_v41 }
 0x532   :  { %v523_v45 = vpop.f32.mrf.mxu0 }
 0x533   :  { %v540_v46 = vpack.c.bf16 %v537_v44, %v536_v43  ;;  %v524_v47 = vadd.f32 %v1087_v57, %v523_v45 }
 0x535   :  { %618 = vmatmul.bf16.vlgmr.msra.gmra.mxu1 %v540_v46  ;;  %v530_v48 = vadd.f32 %v524_v47, %v476_v7 }
 0x537   :  { %v534_v51 = vmul.f32 0.2, %v530_v48 }
 0x539   :  { %v538_v54 = vmax.f32 %v530_v48, %v534_v51 }
 0x53a   :  { %v525_v49 = vpop.f32.mrf.mxu0 }
 0x53b   :  { %v526_v50 = vadd.f32 %v1087_v57, %v525_v49 }
 0x53d   :  { %v531_v52 = vadd.f32 %v526_v50, %v1113_v9 }
 0x53f   :  { %v535_v53 = vmul.f32 0.2, %v531_v52 }
 0x541   :  { %v539_v55 = vmax.f32 %v531_v52, %v535_v53 }
 0x543   :  { %v541_v56 = vpack.c.bf16 %v539_v55, %v538_v54 }
 0x545   :  { %623 = vmatmul.bf16.vlgmr.msra.gmra.mxu2 %v541_v56 }
 0x5b2   :  { %v619_v59 = vpop.f32.mrf.mxu1 }
 0x5b3   :  { %v620_v60 = vadd.f32 %v817_v58, %v619_v59 }
 0x5b5   :  { %629 = vst [vmem:[#allocation11] sm:$0xff] %v620_v60 }
 0x5ba   :  { %v621_v61 = vpop.f32.mrf.mxu1 }
 0x5bb   :  { %v622_v62 = vadd.f32 %v817_v58, %v621_v61 }
 0x5bd   :  { %630 = vst [vmem:[#allocation11 + $0x8] sm:$0xff] %v622_v62 }
 0x5c8   :  { %v624_v63 = vpop.f32.mrf.mxu2 }
 0x5c9   :  { %v625_v57 = vadd.f32 %v817_v58, %v624_v63 }
 0x5cb   :  { %631 = vst [vmem:[#allocation11 + $0x10] sm:$0xff] %v625_v57 }
 0x5d0   :  { %v626_v0 = vpop.f32.mrf.mxu2 }
 0x5d1   :  { %v627_v1 = vadd.f32 %v817_v58, %v626_v0 }
 0x5d3   :  { %632 = vst [vmem:[#allocation11 + $0x18] sm:$0xff] %v627_v1 }
 0x5d4   :  { %645 = dma.vmem_to_hbm [thread:$0]  %s638_s18, 512, %s640_s21, [#allocation4], %s975_s27, %s975_s27, %s976_s28  }
 0x5d5   :  { %968 = dma.done.wait [#allocation4], 512  }
 0x5d6   :  { %969 = vsyncadd [#allocation4], 4294966784 }
 0x5d7   :  { %650 = vsyncpa [#allocation3], 1 }
 0x5d8   :  { %651 = vsyncpa [#allocation6], 1 }
 0x5d9   :  { %652 = vsyncpa [#allocation9], 1 }
 0x5da   :  { %653 = vsyncpa [#allocation4], 1 }

</bundles_post_ra>
